<compile_context>
chip_gen: v6e
topology: v6e:2x2x1
jax: 0.10.0
libtpu: 0.0.40
codegen_flags: <defaults>
</compile_context>

<pallas_src>
import math

import jax
import jax.numpy as jnp
from jax.experimental import pallas as pl
from jax.experimental.pallas import tpu as pltpu


def generator_kernel(x_ref, wconv_ref, bconv_ref, wdiff_ref, bdiff_ref, z_ref):
    """One grid step: tn*L token columns -> z probs, one lane-dense (1,1,tn*L) row."""
    # Causal multi-width Conv1d == single K=kmax*D contraction (bf16 MXU, f32 acc).
    acc = jnp.dot(wconv_ref[...], x_ref[...],
                  preferred_element_type=jnp.float32)          # (C, tn*L) f32
    activ = jnp.maximum(acc + bconv_ref[...], 0.0)             # + bias, ReLU

    # Linear(C->2) + softmax(dim=-1) + [...,1] == sigmoid(logit1 - logit0);
    # F.relu on probabilities is a no-op and is dropped.
    diff = jnp.dot(wdiff_ref[...], activ,
                   preferred_element_type=jnp.float32)         # (1, tn*L) f32
    diff = diff + bdiff_ref[0]                                 # scalar from SMEM
    # sigmoid via EUP exp + approx reciprocal (keeps the divide off the VPU).
    z = pl.reciprocal(1.0 + jnp.exp(-diff), approx=True)
    z_ref[...] = z[None]                                       # (1, 1, tn*L)


def _choose_tiling(n_seq, length, *, row_target=2048):
    """Pick sequences-per-step (tn) and grid size.

    tn*length (per-step lane width) stays a multiple of 128 whenever grid > 1
    so stores are unmasked; the wrapper pads n_seq up to grid*tn (no exact-
    divisor requirement).  When there is enough work for >= 2 full 128-lane
    tiles, grid >= 2 so a v7x megacore ("parallel" axis) can use both TCs.
    """
    step = 128 // math.gcd(length, 128)        # tn granularity for 128-lane tiles
    max_tn = max(step, (row_target // length) // step * step)
    if n_seq >= 2 * step:
        half = (n_seq + 1) // 2
        tn = min(max_tn, (half + step - 1) // step * step)
    else:
        tn = min(max_tn, n_seq)                # single (possibly <128-lane) step
    grid = (n_seq + tn - 1) // tn
    return tn, grid


def generator_forward(x_indx, embeddings, conv_ws, conv_bs, filters,
                      hidden_w, hidden_b):
    """Wrapper: embedding lookup + im2col / weight packing (glue) + Pallas hot path."""
    batch, one, num_choice, length = x_indx.shape
    assert one == 1
    vocab, hidden_dim = embeddings.shape
    filter_num = conv_ws[0].shape[0]
    n_filters = len(filters)
    kmax = max(filters)
    N = batch * num_choice
    total_ch = n_filters * filter_num
    kd = kmax * hidden_dim

    # --- embedding lookup (frozen table), plain JAX glue ---
    x_emb = embeddings[x_indx[:, 0]].reshape(N, length, hidden_dim)   # (N, L, D)

    # --- im2col: tap d of token t is x[t - d], causally zero-padded ---
    taps = [x_emb]
    for d in range(1, kmax):
        taps.append(jnp.pad(x_emb, ((0, 0), (d, 0), (0, 0)))[:, :length, :])
    x_cat = jnp.concatenate(taps, axis=-1)                   # (N, L, kmax*D)

    tn, grid = _choose_tiling(N, length)
    n_pad = grid * tn
    if n_pad > N:
        x_cat = jnp.pad(x_cat, ((0, n_pad - N), (0, 0), (0, 0)))
    # Tokens-on-lanes layout; bf16 halves HBM->VMEM bytes and is MXU-native.
    x_t = x_cat.reshape(n_pad * length, kd).T.astype(jnp.bfloat16)    # (kd, n_pad*L)

    # --- pack Conv1d weights: W[o, i, j] -> Wcat[f*fn + o, d*D + i], d = k-1-j
    packed = jnp.zeros((kmax, hidden_dim, n_filters, filter_num), jnp.float32)
    for f, k in enumerate(filters):
        w = conv_ws[f]                                        # (fn, D, k)
        for d in range(k):
            packed = packed.at[d, :, f, :].set(jnp.transpose(w[:, :, k - 1 - d]))
    wconv = packed.reshape(kd, total_ch).T.astype(jnp.bfloat16)       # (C, kd)
    bconv = jnp.concatenate(conv_bs).reshape(total_ch, 1).astype(jnp.float32)
    # 2-class softmax head folded into a sigmoid of the logit difference.
    wdiff = (hidden_w[1] - hidden_w[0]).reshape(1, total_ch).astype(jnp.float32)
    bdiff = (hidden_b[1] - hidden_b[0]).reshape(1).astype(jnp.float32)

    lanes = tn * length
    z_flat = pl.pallas_call(
        generator_kernel,
        out_shape=jax.ShapeDtypeStruct((grid, 1, lanes), jnp.float32),
        grid_spec=pltpu.PrefetchScalarGridSpec(
            num_scalar_prefetch=0,
            grid=(grid,),
            in_specs=[
                pl.BlockSpec((kd, lanes), lambda g: (0, g)),          # x (im2col)
                pl.BlockSpec((total_ch, kd), lambda g: (0, 0)),       # conv weights
                pl.BlockSpec((total_ch, 1), lambda g: (0, 0)),        # conv bias
                pl.BlockSpec((1, total_ch), lambda g: (0, 0)),        # w1 - w0
                pl.BlockSpec(memory_space=pltpu.MemorySpace.SMEM),    # b1 - b0 scalar
            ],
            out_specs=pl.BlockSpec((1, 1, lanes), lambda g: (g, 0, 0)),
        ),
        compiler_params=pltpu.CompilerParams(
            dimension_semantics=("parallel",)),
    )(x_t, wconv, bconv, wdiff, bdiff)

    z = z_flat.reshape(n_pad, length)[:N].reshape(batch, num_choice, length)
    # Eval-mode hard selection is a trivial derived quantity -> plain JAX,
    # halving the kernel's output DMA bytes.
    selection = (z > 0.5).astype(jnp.float32)
    return selection, z


def reference_forward(x_indx, embeddings, conv_ws, conv_bs, filters,
                      hidden_w, hidden_b):
    """Pure-JAX f32 reference mirroring the PyTorch module."""
    batch, _, num_choice, length = x_indx.shape
    x = embeddings[x_indx[:, 0]]                              # (B, C, L, D)
    D = x.shape[-1]
    xt = x.reshape(batch * num_choice, length, D).transpose(0, 2, 1)   # (N, D, L)
    outs = []
    for k, w, b in zip(filters, conv_ws, conv_bs):
        xpad = jnp.pad(xt, ((0, 0), (0, 0), (k - 1, 0)))
        out = jax.lax.conv_general_dilated(
            xpad, w, window_strides=(1,), padding='VALID',
            dimension_numbers=('NCH', 'OIH', 'NCH')) + b[None, :, None]
        outs.append(out)
    activ = jnp.maximum(jnp.concatenate(outs, axis=1), 0.0)   # (N, 3fn, L)
    activ = jnp.maximum(activ, 0.0)
    a = activ.transpose(0, 2, 1).reshape(batch, num_choice, length, -1)
    logits = a @ hidden_w.T + hidden_b
    probs = jax.nn.softmax(logits, axis=3)
    z = probs[..., 1]
    return (z > 0.5).astype(jnp.float32), z


if __name__ == "__main__":
    # Small, module-consistent shapes.
    batch, num_choice, length = 2, 4, 16
    vocab_size, hidden_dim = 50, 32
    filters = (3, 4, 5)
    filter_num = 16
    z_dim = 2

    key = jax.random.PRNGKey(0)
    k_emb, k_idx, k_h, k_hb, *k_conv = jax.random.split(key, 4 + 2 * len(filters))

    embeddings = 0.5 * jax.random.normal(k_emb, (vocab_size, hidden_dim), jnp.float32)
    x_indx = jax.random.randint(k_idx, (batch, 1, num_choice, length), 0, vocab_size,
                                dtype=jnp.int32)

    conv_ws, conv_bs = [], []
    for i, k in enumerate(filters):
        scale = 1.0 / jnp.sqrt(jnp.float32(hidden_dim * k))
        conv_ws.append(scale * jax.random.normal(
            k_conv[2 * i], (filter_num, hidden_dim, k), jnp.float32))
        conv_bs.append(0.1 * jax.random.normal(
            k_conv[2 * i + 1], (filter_num,), jnp.float32))

    hidden_w = 0.1 * jax.random.normal(k_h, (z_dim, len(filters) * filter_num),
                                       jnp.float32)
    hidden_b = 0.1 * jax.random.normal(k_hb, (z_dim,), jnp.float32)

    selection, z = generator_forward(x_indx, embeddings, conv_ws, conv_bs,
                                     filters, hidden_w, hidden_b)
    jax.block_until_ready((selection, z))

    sel_ref, z_ref = reference_forward(x_indx, embeddings, conv_ws, conv_bs,
                                       filters, hidden_w, hidden_b)
    assert z.shape == (batch, num_choice, length)
    assert selection.shape == (batch, num_choice, length)
    # bf16 MXU inputs + approx reciprocal -> small rounding vs the f32 reference.
    # (selection may differ for z values sitting exactly near 0.5; only z asserted.)
    assert jnp.allclose(z, z_ref, atol=1e-2), "z mismatch vs reference"

    print("KERNEL_OK")
</pallas_src>

<mosaic_0001>
module attributes {stable_mosaic.version = 11 : i64} {
  func.func @generator_kernel(%arg0: i32, %arg1: memref<160x128xbf16, #tpu.memory_space<vmem>>, %arg2: memref<48x160xbf16, #tpu.memory_space<vmem>>, %arg3: memref<48x1xf32, #tpu.memory_space<vmem>>, %arg4: memref<1x48xf32, #tpu.memory_space<vmem>>, %arg5: memref<1xf32, #tpu.memory_space<smem>>, %arg6: memref<1x1x128xf32, #tpu.memory_space<vmem>>) attributes {dimension_semantics = [#tpu.dimension_semantics<parallel>], iteration_bounds = array<i64: 1>, scalar_prefetch = 0 : i64, scratch_operands = 0 : i64, tpu.core_type = #tpu.core_type<tc>, window_params = [{transform_indices = @transform_0, window_bounds = array<i64: 160, 128>}, {pipeline_mode = #tpu.pipeline_mode<synchronous>, transform_indices = @transform_1, window_bounds = array<i64: 48, 160>}, {pipeline_mode = #tpu.pipeline_mode<synchronous>, transform_indices = @transform_2, window_bounds = array<i64: 48, 1>}, {pipeline_mode = #tpu.pipeline_mode<synchronous>, transform_indices = @transform_3, window_bounds = array<i64: 1, 48>}, {transform_indices = @transform_4, window_bounds = array<i64: 1>}, {transform_indices = @transform_5, window_bounds = array<i64: 1, 1, 128>}]} {
    %c0 = arith.constant 0 : index
    %c0_0 = arith.constant 0 : index
    %0 = vector.load %arg2[%c0, %c0_0] : memref<48x160xbf16, #tpu.memory_space<vmem>>, vector<48x160xbf16>
    %c0_1 = arith.constant 0 : index
    %c0_2 = arith.constant 0 : index
    %1 = vector.load %arg1[%c0_1, %c0_2] : memref<160x128xbf16, #tpu.memory_space<vmem>>, vector<160x128xbf16>
    %cst = arith.constant dense<0.000000e+00> : vector<48x128xf32>
    %2 = tpu.matmul %0, %1, %cst {dimension_numbers = #tpu.dot_dimension_numbers<[1], [0], [0], [1], [0, 0, 1, 1], [], []>} : vector<48x160xbf16>, vector<160x128xbf16>, vector<48x128xf32> -> vector<48x128xf32>
    %c0_3 = arith.constant 0 : index
    %c0_4 = arith.constant 0 : index
    %3 = vector.load %arg3[%c0_3, %c0_4] : memref<48x1xf32, #tpu.memory_space<vmem>>, vector<48x1xf32>
    %4 = vector.broadcast %3 : vector<48x1xf32> to vector<48x128xf32>
    %5 = arith.addf %2, %4 : vector<48x128xf32>
    %cst_5 = arith.constant 0.000000e+00 : f32
    %6 = vector.broadcast %cst_5 : f32 to vector<48x128xf32>
    %7 = arith.maximumf %5, %6 : vector<48x128xf32>
    %c0_6 = arith.constant 0 : index
    %c0_7 = arith.constant 0 : index
    %8 = vector.load %arg4[%c0_6, %c0_7] : memref<1x48xf32, #tpu.memory_space<vmem>>, vector<1x48xf32>
    %cst_8 = arith.constant dense<0.000000e+00> : vector<1x128xf32>
    %9 = tpu.matmul %8, %7, %cst_8 {dimension_numbers = #tpu.dot_dimension_numbers<[1], [0], [0], [1], [0, 0, 1, 1], [], []>} : vector<1x48xf32>, vector<48x128xf32>, vector<1x128xf32> -> vector<1x128xf32>
    %c0_9 = arith.constant 0 : index
    %10 = memref.load %arg5[%c0_9] : memref<1xf32, #tpu.memory_space<smem>>
    %11 = vector.broadcast %10 : f32 to vector<1x128xf32>
    %12 = arith.addf %9, %11 : vector<1x128xf32>
    %cst_10 = arith.constant 0.000000e+00 : f32
    %13 = vector.broadcast %cst_10 : f32 to vector<1x128xf32>
    %14 = arith.subf %13, %12 : vector<1x128xf32>
    %15 = math.exp %14 : vector<1x128xf32>
    %cst_11 = arith.constant 1.000000e+00 : f32
    %16 = vector.broadcast %cst_11 : f32 to vector<1x128xf32>
    %17 = arith.addf %16, %15 : vector<1x128xf32>
    %18 = tpu.reciprocal %17 {approx = true} : vector<1x128xf32> -> vector<1x128xf32>
    %19 = vector.shape_cast %18 : vector<1x128xf32> to vector<1x1x128xf32>
    %c0_12 = arith.constant 0 : index
    %c0_13 = arith.constant 0 : index
    %c0_14 = arith.constant 0 : index
    %20 = vector.load %arg6[%c0_12, %c0_13, %c0_14] : memref<1x1x128xf32, #tpu.memory_space<vmem>>, vector<1x1x128xf32>
    tpu.vector_store %arg6[%c0_12, %c0_13, %c0_14], %19 {strides = array<i32>} : memref<1x1x128xf32, #tpu.memory_space<vmem>>, vector<1x1x128xf32>,
    return
  }
  func.func @transform_0(%arg0: i32) -> (i32, i32) {
    %c0_i32 = arith.constant 0 : i32
    %c0_i32_0 = arith.constant 0 : i32
    return %c0_i32, %arg0 : i32, i32
  }
  func.func @transform_1(%arg0: i32) -> (i32, i32) {
    %c0_i32 = arith.constant 0 : i32
    %c0_i32_0 = arith.constant 0 : i32
    %c0_i32_1 = arith.constant 0 : i32
    return %c0_i32, %c0_i32_0 : i32, i32
  }
  func.func @transform_2(%arg0: i32) -> (i32, i32) {
    %c0_i32 = arith.constant 0 : i32
    %c0_i32_0 = arith.constant 0 : i32
    %c0_i32_1 = arith.constant 0 : i32
    return %c0_i32, %c0_i32_0 : i32, i32
  }
  func.func @transform_3(%arg0: i32) -> (i32, i32) {
    %c0_i32 = arith.constant 0 : i32
    %c0_i32_0 = arith.constant 0 : i32
    %c0_i32_1 = arith.constant 0 : i32
    return %c0_i32, %c0_i32_0 : i32, i32
  }
  func.func @transform_4(%arg0: i32) -> i32 {
    %c0_i32 = arith.constant 0 : i32
    %c0_i32_0 = arith.constant 0 : i32
    return %c0_i32 : i32
  }
  func.func @transform_5(%arg0: i32) -> (i32, i32, i32) {
    %c0_i32 = arith.constant 0 : i32
    %c0_i32_0 = arith.constant 0 : i32
    %c0_i32_1 = arith.constant 0 : i32
    return %arg0, %c0_i32, %c0_i32_0 : i32, i32, i32
  }
}

</mosaic_0001>

<bundles_post_ra>
// kernel: tpu_custom_call.1
= control target key start
LH: loop header
LB: loop body
LE: loop exit
PB: predicated region body
PF: predicated region fallthrough
CT: control target
= control target key end

     0   :  { %11 = vsyncpa [#allocation4], 0  ;;  %s605_s0 = inlined_call_operand.hbm [shape: bf16[160,128], index: 0, kind: input, shape index: {}]   ;;  %s606_s1 = inlined_call_operand.vmem [shape: bf16[48,160], index: 1, kind: input, shape index: {}]   ;;  %s607_s2 = inlined_call_operand.vmem [shape: f32[48,1], index: 2, kind: input, shape index: {}]   ;;  %s608_s3 = inlined_call_operand.vmem [shape: f32[1,48], index: 3, kind: input, shape index: {}]   ;;  %s609_s4 = inlined_call_operand.<no memory space> [shape: f32[1], index: 4, kind: input, shape index: {}]   ;;  %s610_s5 = inlined_call_operand.hbm [shape: f32[1,1,128], index: 5, kind: output, shape index: {}]  }
   0x1   :  { %12 = vsyncpa [#allocation5], 0  ;;  %s495_s18 = smov [#allocation3]  }
   0x2   :  { %s18_s19 = sshll.u32 %s495_s18, 4  ;;  %s19_s19 = int_to_ptr.vmem [resolvable:$true] %s18_s19 }
   0x3   :  { %s459_s20 = scalar_lea.vmem %s19_s19, 1280  ;;  %p464_p1 = scmp.lt.s32.totalorder %s19_s19, %s19_s19 }
   0x4   :  { %p460_p0 = scmp.ne.s32.totalorder %s19_s19, %s459_s20  ;;  %p465_p2 = scmp.lt.s32.totalorder %s459_s20, %s459_s20 }
   0x6   :  { %p466_p3 = por %p465_p2, %p464_p1 }
   0x8   :  { %p467_p4 = pnand %p466_p3, %p460_p0 }
   0xa   :  { %470 = shalt.err (!%p467_p4)
}
   0xb   :  { %s496_s21 = smov 64   ;;  %s497_s22 = smov 4  }
   0xc   :  { %24 = dma.hbm_to_vmem [thread:$0]  %s605_s0, 1280, %s19_s19, [#allocation4], %s496_s21, %s496_s21, %s497_s22  }
   0xd   :  { %491 = dma.done.wait [#allocation4], 1280  }
   0xe   :  { %492 = vsyncadd [#allocation4], 4294966016  ;;  %v498_v0 = vmov 0   ;;  %v428_v1 = vld [vmem:[#allocation3 + $0x38] sm:$0xff]   ;;  %v429_v2 = vld [vmem:[#allocation3 + $0x30] sm:$0xff]   ;;  %vm186_vm0 = vcmask 261120   ;;  %v261_v55 = vstv %s609_s4 }
   0xf   :  { %399 = vmatprep.subr.bf16.mxu1 %v498_v0  ;;  %196 = vmatprep.subr.bf16.mxu0 %v498_v0  ;;  %v430_v3 = vld [vmem:[#allocation3 + $0x28] sm:$0xff]   ;;  %v431_v4 = vld [vmem:[#allocation3 + $0x20] sm:$0xff]   ;;  %v440_v5 = vld [vmem:[%s606_s1 + $0x14] ss:$8 sps:$4 sm:$0xff]   ;;  %v499_v23 = vmov 0.0   ;;  %vm500_vm1 = vmmov 0  }
  0x10   :  { %427 = vset.pattern.permute.xlu1 %v498_v0  ;;  %426 = vset.pattern.permute.xlu0 %v498_v0  ;;  %v443_v6 = vld [vmem:[%s606_s1 + $0x4] ss:$8 sps:$4 sm:$0xff]   ;;  %v432_v7 = vld [vmem:[#allocation3 + $0x18] sm:$0xff]   ;;  %v65_v10 = vld [vmem:[%s607_s2 + $0x10] sm:$0xff]  ;;  %vm262_vm2 = vcmask 392192   ;;  %s501_s0 = smov [#allocation6]  }
  0x11   :  { %409 = vmatpush1.bf16.msra.mxu1 %v428_v1  ;;  %197 = vmatpush1.bf16.msra.mxu0 %v428_v1  ;;  %v66_v8 = vld [vmem:[%s607_s2 + $0x18] sm:$0xff]  ;;  %v68_v9 = vld [vmem:[%s607_s2 + $0x28] sm:$0xff]  ;;  %v433_v11 = vld [vmem:[#allocation3 + $0x10] sm:$0xff]   ;;  %s348_s25 = sshll.u32 %s501_s0, 4  ;;  %s349_s25 = int_to_ptr.vmem [resolvable:$true] %s348_s25 }
  0x12   :  { %400 = vmatprep.subr.bf16.mxu1 %v498_v0  ;;  %198 = vmatprep.subr.bf16.mxu0 %v498_v0  ;;  %v67_v12 = vld [vmem:[%s607_s2 + $0x20] sm:$0xff]  ;;  %v434_v14 = vld [vmem:[#allocation3 + $0x8] sm:$0xff]   ;;  %v438_v19 = vld [vmem:[%s606_s1 + $0x10] ss:$8 sps:$4 sm:$0xff]   ;;  %s475_s26 = scalar_lea.vmem %s349_s25, 32  ;;  %p476_p6 = scmp.lt.s32.totalorder %s349_s25, %s349_s25 }
  0x13   :  { %374 = vmatprep.mubr.msk.bf16.mxu1 %vm186_vm0, %v440_v5  ;;  %373 = vmatprep.mubr.msk.bf16.mxu0 %vm186_vm0, %v443_v6  ;;  %v63_v13 = vld [vmem:[%s607_s2] sm:$0xff]  ;;  %v64_v15 = vld [vmem:[%s607_s2 + $0x8] sm:$0xff] }
  0x14   :  { %86 = vperm.xlu1 %427, %v66_v8   ;;  %96 = vperm.xlu0 %426, %v68_v9   ;;  %v435_v16 = vld [vmem:[#allocation3] sm:$0xff]   ;;  %v436_v17 = vld [vmem:[#allocation3 + $0x48] sm:$0xff]  }
  0x15   :  { %410 = vmatpush1.bf16.msra.mxu1 %v429_v2  ;;  %199 = vmatpush1.bf16.msra.mxu0 %v429_v2  ;;  %v437_v18 = vld [vmem:[#allocation3 + $0x40] sm:$0xff]  }
  0x16   :  { %401 = vmatprep.subr.bf16.mxu1 %v498_v0  ;;  %200 = vmatprep.subr.bf16.mxu0 %v498_v0  ;;  %v441_v20 = vld [vmem:[%s606_s1] ss:$8 sps:$4 sm:$0xff]   ;;  %v444_v21 = vld [vmem:[%s606_s1 + $0x24] ss:$8 sps:$4 sm:$0xff]  }
  0x17   :  { %v446_v22 = vld [vmem:[%s606_s1 + $0x20] ss:$8 sps:$4 sm:$0xff]  }
  0x18   :  { %81 = vperm.xlu1 %427, %v65_v10   ;;  %91 = vperm.xlu0 %426, %v67_v12   ;;  %v259_v54 = vld [vmem:[%s608_s3] sm:$0x1]  ;;  %s471_s3 = scalar_lea.vmem %s349_s25, 16 }
  0x19   :  { %411 = vmatpush1.bf16.msra.mxu1 %v430_v3  ;;  %201 = vmatpush1.bf16.msra.mxu0 %v430_v3  ;;  %p472_p5 = scmp.ne.s32.totalorder %s349_s25, %s471_s3  ;;  %p477_p7 = scmp.lt.s32.totalorder %s475_s26, %s471_s3 }
  0x1a   :  { %402 = vmatprep.subr.bf16.mxu1 %v498_v0  ;;  %202 = vmatprep.subr.bf16.mxu0 %v498_v0 }
  0x1b   :  { %p478_p8 = por %p477_p7, %p476_p6 }
  0x1c   :  { %71 = vperm.xlu1 %427, %v63_v13   ;;  %76 = vperm.xlu0 %426, %v64_v15  }
  0x1d   :  { %412 = vmatpush1.bf16.msra.mxu1 %v431_v4  ;;  %203 = vmatpush1.bf16.msra.mxu0 %v431_v4  ;;  %p479_p9 = pnand %p478_p8, %p472_p5 }
  0x1e   :  { %403 = vmatprep.subr.bf16.mxu1 %v498_v0  ;;  %204 = vmatprep.subr.bf16.mxu0 %v498_v0 }
  0x21   :  { %413 = vmatpush1.bf16.msra.mxu1 %v432_v7  ;;  %205 = vmatpush1.bf16.msra.mxu0 %v432_v7 }
  0x22   :  { %404 = vmatprep.subr.bf16.mxu1 %v498_v0  ;;  %206 = vmatprep.subr.bf16.mxu0 %v498_v0 }
  0x25   :  { %414 = vmatpush1.bf16.msra.mxu1 %v433_v11  ;;  %207 = vmatpush1.bf16.msra.mxu0 %v433_v11 }
  0x26   :  { %405 = vmatprep.subr.bf16.mxu1 %v498_v0  ;;  %208 = vmatprep.subr.bf16.mxu0 %v498_v0 }
  0x29   :  { %415 = vmatpush1.bf16.msra.mxu1 %v434_v14  ;;  %209 = vmatpush1.bf16.msra.mxu0 %v434_v14 }
  0x2a   :  { %406 = vmatprep.subr.bf16.mxu1 %v498_v0  ;;  %210 = vmatprep.subr.bf16.mxu0 %v498_v0 }
  0x2d   :  { %416 = vmatpush1.bf16.msra.mxu1 %v435_v16  ;;  %211 = vmatpush1.bf16.msra.mxu0 %v435_v16 }
  0x2e   :  { %407 = vmatprep.subr.bf16.mxu1 %v498_v0  ;;  %224 = vmatprep.subr.bf16.mxu0 %v498_v0 }
  0x31   :  { %417 = vmatpush2.bf16.msra.mxu1 %v436_v17  ;;  %225 = vmatpush2.bf16.msra.mxu0 %v436_v17 }
  0x32   :  { %408 = vmatprep.subr.bf16.mxu1 %v498_v0  ;;  %226 = vmatprep.subr.bf16.mxu0 %v498_v0 }
  0x35   :  { %418 = vmatpush2.bf16.msra.mxu1 %v437_v18  ;;  %227 = vmatpush2.bf16.msra.mxu0 %v437_v18 }
  0x36   :  { %384 = vmatprep.subr.mxu0 %v499_v23 }
  0x38   :  { %237 = vmatmul.mubr.bf16.vlgmr.msra.gmra.mxu1 %v438_v19  ;;  %229 = vmatmul.mubr.bf16.vlgmr.msra.gmra.mxu0 %v441_v20 }
  0x39   :  { %375 = vmatprep.mubr.msk.bf16.mxu1 %vm186_vm0, %v444_v21  ;;  %396 = vmatprep.mubr.msk.f32.mxu0 %vm500_vm1, %v499_v23 }
  0x40   :  { %245 = vmatmul.mubr.bf16.gmra.mxu1 %v446_v22 }
  0x8f   :  { %v97_v28 = vpop.permute.xlu0 %96  ;;  %v87_v33 = vpop.permute.xlu1 %86 }
  0x93   :  { %v92_v35 = vpop.permute.xlu0 %91  ;;  %v82_v40 = vpop.permute.xlu1 %81 }
  0x97   :  { %v77_v44 = vpop.permute.xlu0 %76  ;;  %v72_v47 = vpop.permute.xlu1 %71 }
  0xf8   :  { %v238_v24 = vpop.f32.mrf.mxu1  ;;  %v230_v25 = vpop.f32.mrf.mxu0 }
  0xf9   :  { %v239_v45 = vadd.f32 %v238_v24, %v82_v40  ;;  %v231_v51 = vadd.f32 %v230_v25, %v72_v47 }
  0xfa   :  { %v240_v26 = vpop.f32.mrf.mxu1  ;;  %v232_v27 = vpop.f32.mrf.mxu0 }
  0xfb   :  { %v255_v50 = vmax.f32 %v239_v45, 0.0  ;;  %v253_v53 = vmax.f32 %v231_v51, 0.0 }
  0xfc   :  { %v241_v29 = vpop.f32.mrf.mxu1  ;;  %v233_v30 = vpop.f32.mrf.mxu0 }
  0xfd   :  { %v242_v42 = vadd.f32 %v241_v29, %v87_v33  ;;  %v234_v49 = vadd.f32 %v233_v30, %v77_v44 }
  0xfe   :  { %v243_v31 = vpop.f32.mrf.mxu1  ;;  %v235_v32 = vpop.f32.mrf.mxu0 }
  0xff   :  { %v256_v48 = vmax.f32 %v242_v42, 0.0  ;;  %v254_v52 = vmax.f32 %v234_v49, 0.0 }
 0x100   :  { %v246_v34 = vpop.f32.mrf.mxu1 }
 0x101   :  { %v247_v38 = vadd.f32 %v246_v34, %v92_v35 }
 0x102   :  { %v248_v36 = vpop.f32.mrf.mxu1 }
 0x103   :  { %v257_v46 = vmax.f32 %v247_v38, 0.0 }
 0x104   :  { %v249_v37 = vpop.f32.mrf.mxu1 }
 0x105   :  { %v250_v39 = vadd.f32 %v249_v37, %v97_v28 }
 0x106   :  { %v251_v41 = vpop.f32.mrf.mxu1 }
 0x107   :  { %v258_v43 = vmax.f32 %v250_v39, 0.0 }
 0x109   :  { %385 = vmatpush3.msra.mxu0 %v258_v43 }
 0x10a   :  { %386 = vmatprep.subr.mxu0 %v499_v23 }
 0x10b   :  { %387 = vmatpush3.msra.mxu0 %v257_v46 }
 0x10c   :  { %388 = vmatprep.subr.mxu0 %v499_v23 }
 0x10d   :  { %389 = vmatpush3.msra.mxu0 %v256_v48 }
 0x10e   :  { %390 = vmatprep.subr.mxu0 %v499_v23 }
 0x10f   :  { %391 = vmatpush3.msra.mxu0 %v255_v50 }
 0x110   :  { %392 = vmatprep.subr.mxu0 %v499_v23 }
 0x111   :  { %393 = vmatpush3.msra.mxu0 %v254_v52 }
 0x112   :  { %394 = vmatprep.subr.mxu0 %v499_v23 }
 0x113   :  { %395 = vmatpush3.msra.mxu0 %v253_v53 }
 0x114   :  { %397 = vmatmul.mubr.msk.f32.vlgmr.msra.gmra.mxu0 %vm262_vm2, %v259_v54 }
 0x1d4   :  { %v332_v56 = vpop.f32.mrf.mxu0 }
 0x1d5   :  { %v333_v57 = vadd.f32 %v332_v56, %v261_v55 }
 0x1d6   :  { %v398_v58 = vpop.f32.mrf.mxu0 }
 0x1d7   :  { %v336_v59 = vsub.f32 0.0, %v333_v57 }
 0x1d9   :  { %v337_v60 = vmul.f32 1.442695, %v336_v59 }
 0x1db   :  { %447 = vpow2.f32 %v337_v60 }
 0x1e8   :  { %v448_v61 = vpop.eup %447 }
 0x1e9   :  { %v339_v62 = vadd.f32 1.0, %v448_v61 }
 0x1eb   :  { %449 = vrcp.f32 %v339_v62 }
 0x1f8   :  { %v450_v63 = vpop.eup %449 }
 0x1f9   :  { %341 = vst [vmem:[#allocation6] sm:$0x1] %v450_v63 }
 0x1fa   :  { %482 = shalt.err (!%p479_p9)
}
 0x1fb   :  { %351 = dma.vmem_to_hbm [thread:$0]  %s349_s25, 16, %s610_s5, [#allocation5]  }
 0x1fc   :  { %493 = dma.done.wait [#allocation5], 16  }
 0x1fd   :  { %494 = vsyncadd [#allocation5], 4294967280 }
 0x1fe   :  { %355 = vsyncpa [#allocation4], 1 }
 0x1ff   :  { %356 = vsyncpa [#allocation5], 1 }

</bundles_post_ra>
